<compile_context>
chip_gen: v7x
topology: tpu7x:2x2x1
jax: 0.10.0
libtpu: 0.0.40
codegen_flags: <defaults>
</compile_context>

<pallas_src>
import math

import jax
import jax.numpy as jnp
from jax.experimental import pallas as pl
from jax.experimental.pallas import tpu as pltpu

_SUBLANE = 8  # f32 sublane granularity for tiled (non-full-extent) dims


def _round_up(x, m):
    return (x + m - 1) // m * m


def _vmem_capacity_bytes():
    try:
        return int(pltpu.get_tpu_info().vmem_capacity_bytes)
    except Exception:
        return 64 << 20  # conservative: v7x per-TensorCore VMEM


def _sdpa_kernel(q_ref, k_ref, v_ref, ctx_ref, attn_ref):
    # q_ref: (1, tq, D) bf16, pre-scaled by 1/sqrt(dim)
    # k_ref, v_ref: (1, Lk, D) bf16 (resident across the inner q sweep)
    # ctx_ref: (1, tq, D) f32; attn_ref: (1, tq, Lk)
    q = q_ref[0]
    k = k_ref[0]

    # score = (Q / sqrt(dim)) @ K^T, contracting over D (MXU, f32 accumulate).
    score = jax.lax.dot_general(
        q, k,
        dimension_numbers=(((1,), (1,)), ((), ())),
        preferred_element_type=jnp.float32,
    )  # (tq, Lk) f32

    # Numerically-stable softmax, strictly f32 on the VPU/EUP.  Exact
    # reciprocal: these weights are returned to the caller and must sum to 1.
    m = jnp.max(score, axis=-1, keepdims=True)
    e = jnp.exp(score - m)
    denom = jnp.sum(e, axis=-1, keepdims=True)
    attn = e * pl.reciprocal(denom, approx=False)  # (tq, Lk) f32

    # context = attn @ V  (bf16 operands, f32 accumulation on the MXU).
    ctx = jnp.dot(attn.astype(jnp.bfloat16), v_ref[0],
                  preferred_element_type=jnp.float32)

    attn_ref[0] = attn.astype(attn_ref.dtype)
    ctx_ref[0] = ctx.astype(ctx_ref.dtype)


def scaled_dot_product_attention(query, key, value, dim, *,
                                 tile_q=256, attn_dtype=jnp.float32):
    """query: (B, Lq, D), key/value: (B, Lk, D). Returns (context, attn)."""
    B, Lq, D = query.shape
    _, Lk, _ = key.shape
    assert key.shape == (B, Lk, D) and value.shape == (B, Lk, D)

    attn_item = jnp.dtype(attn_dtype).itemsize
    cap = _vmem_capacity_bytes()

    def vmem_estimate(tq_, kv_bufs):
        return (2 * tq_ * D * 2                 # Q blocks (bf16, double-buffered)
                + kv_bufs * 2 * Lk * D * 2      # K + V blocks (bf16)
                + 2 * tq_ * D * 4               # ctx blocks (f32, double-buffered)
                + 2 * tq_ * Lk * attn_item      # attn blocks (double-buffered)
                + 4 * tq_ * Lk * 4              # f32 softmax temporaries
                + (2 << 20))                    # misc headroom

    # q tile: multiple of 8 when Lq is tiled, auto-shrunk under VMEM pressure,
    # or the full (unpadded) Lq extent when a single tile suffices.
    tq = _round_up(min(tile_q, _round_up(Lq, _SUBLANE)), _SUBLANE)
    while vmem_estimate(tq, 1) > int(0.85 * cap) and tq > _SUBLANE:
        tq = max(_SUBLANE, _round_up(tq // 2, _SUBLANE))
    if tq >= Lq:
        tq, Lqp, n_q = Lq, Lq, 1          # single full-extent q block, no pad
    else:
        Lqp = _round_up(Lq, tq)
        n_q = Lqp // tq

    inv_sqrt_dim = 1.0 / math.sqrt(dim)
    # Fold the 1/sqrt(dim) scale into Q and downcast Q/K/V to bf16 once in the
    # wrapper (fuses with the pad); the kernel then DMAs bf16 blocks directly.
    qs = (query.astype(jnp.float32) * inv_sqrt_dim).astype(jnp.bfloat16)
    if Lqp != Lq:
        qs = jnp.pad(qs, ((0, 0), (0, Lqp - Lq), (0, 0)))
    ks = key.astype(jnp.bfloat16)
    vs = value.astype(jnp.bfloat16)

    out_shapes = (
        jax.ShapeDtypeStruct((B, Lqp, D), jnp.float32),   # context
        jax.ShapeDtypeStruct((B, Lqp, Lk), attn_dtype),   # attention weights
    )

    # Budget sized for the worst case (double-buffered K/V fallback), capped at
    # the real device capacity, never below the 32 MiB scoped default.
    vmem_limit = int(min(cap, max(vmem_estimate(tq, 2), 32 << 20)))

    cost = pl.CostEstimate(
        flops=2 * 2 * B * Lqp * Lk * D,                    # QK^T + attn@V
        transcendentals=B * Lqp * Lk,                      # exp
        bytes_accessed=(2 * B * (Lqp * D + 2 * Lk * D)     # bf16 Q, K, V reads
                        + 4 * B * Lqp * D                  # f32 ctx write
                        + attn_item * B * Lqp * Lk),       # attn write
    )

    def build(kv_pipeline_mode):
        kv_kwargs = ({} if kv_pipeline_mode is None
                     else {"pipeline_mode": kv_pipeline_mode})
        grid_spec = pltpu.PrefetchScalarGridSpec(
            num_scalar_prefetch=0,
            # b outer / q-tile inner: the K/V block index is constant across
            # the inner sweep, so their DMA is issued once per batch.
            grid=(B, n_q),
            in_specs=[
                pl.BlockSpec((1, tq, D), lambda b, i: (b, i, 0)),             # Q tile
                pl.BlockSpec((1, Lk, D), lambda b, i: (b, 0, 0), **kv_kwargs),  # K
                pl.BlockSpec((1, Lk, D), lambda b, i: (b, 0, 0), **kv_kwargs),  # V
            ],
            out_specs=(
                pl.BlockSpec((1, tq, D), lambda b, i: (b, i, 0)),    # context tile
                pl.BlockSpec((1, tq, Lk), lambda b, i: (b, i, 0)),   # attn tile
            ),
        )
        return pl.pallas_call(
            _sdpa_kernel,
            out_shape=out_shapes,
            grid_spec=grid_spec,
            compiler_params=pltpu.CompilerParams(
                dimension_semantics=("parallel", "parallel"),
                vmem_limit_bytes=vmem_limit,
            ),
            cost_estimate=cost,
        )

    try:
        # K/V change only once per batch -> single-buffer them (saves
        # 2*Lk*D*2 bytes of VMEM per tensor; matters on v7x's 64 MiB VMEM).
        ctx, attn = build(pl.Buffered(1))(qs, ks, vs)
    except Exception:
        # Fallback: default double-buffering if buffer_count=1 is rejected.
        ctx, attn = build(None)(qs, ks, vs)

    if Lqp != Lq:
        ctx = ctx[:, :Lq]
        attn = attn[:, :Lq]
    return ctx, attn


def _reference(query, key, value, dim):
    score = jnp.einsum("bqd,bkd->bqk", query, key) / math.sqrt(dim)
    attn = jax.nn.softmax(score, axis=-1)
    context = jnp.einsum("bqk,bkd->bqd", attn, value)
    return context, attn


def _check(B, Lq, Lk, D, dim, seed, **kwargs):
    kq, kk, kv = jax.random.split(jax.random.PRNGKey(seed), 3)
    query = jax.random.normal(kq, (B, Lq, D), dtype=jnp.float32)
    key_ = jax.random.normal(kk, (B, Lk, D), dtype=jnp.float32)
    value = jax.random.normal(kv, (B, Lk, D), dtype=jnp.float32)

    context, attn = scaled_dot_product_attention(query, key_, value, dim, **kwargs)
    context = jax.block_until_ready(context)
    attn = jax.block_until_ready(attn).astype(jnp.float32)

    ref_ctx, ref_attn = _reference(query, key_, value, dim)
    assert context.shape == (B, Lq, D) and attn.shape == (B, Lq, Lk)
    # bf16 matmul operands -> slightly looser tolerance than pure f32.
    assert jnp.allclose(attn.sum(-1), 1.0, atol=1e-2), "attn rows do not sum to 1"
    assert jnp.allclose(context, ref_ctx, atol=2e-2, rtol=2e-2), "context mismatch"
    assert jnp.allclose(attn, ref_attn, atol=2e-2, rtol=2e-2), "attn mismatch"


if __name__ == "__main__":
    # Primary demo at the module's small shapes: batch=2, q_len=k_len=8, d_model=32.
    _check(B=2, Lq=8, Lk=8, D=32, dim=32, seed=0)
    # Multi-q-tile path with Lq padding, lane-unaligned Lk=40, unpadded D=48 and
    # the recommended bf16 attention-weight output.
    _check(B=2, Lq=300, Lk=40, D=48, dim=48, seed=1,
           tile_q=128, attn_dtype=jnp.bfloat16)
    print("KERNEL_OK")
</pallas_src>

<mosaic_0001>
module attributes {stable_mosaic.version = 11 : i64} {
  func.func @_sdpa_kernel(%arg0: i32, %arg1: i32, %arg2: memref<1x8x32xbf16, #tpu.memory_space<vmem>>, %arg3: memref<1x8x32xbf16, #tpu.memory_space<vmem>>, %arg4: memref<1x8x32xbf16, #tpu.memory_space<vmem>>, %arg5: memref<1x8x32xf32, #tpu.memory_space<vmem>>, %arg6: memref<1x8x8xf32, #tpu.memory_space<vmem>>) attributes {dimension_semantics = [#tpu.dimension_semantics<parallel>, #tpu.dimension_semantics<parallel>], iteration_bounds = array<i64: 2, 1>, scalar_prefetch = 0 : i64, scratch_operands = 0 : i64, tpu.core_type = #tpu.core_type<tc>, window_params = [{transform_indices = @transform_0, window_bounds = array<i64: 1, 8, 32>}, {pipeline_mode = #tpu.pipeline_mode<synchronous>, transform_indices = @transform_1, window_bounds = array<i64: 1, 8, 32>}, {pipeline_mode = #tpu.pipeline_mode<synchronous>, transform_indices = @transform_2, window_bounds = array<i64: 1, 8, 32>}, {transform_indices = @transform_3, window_bounds = array<i64: 1, 8, 32>}, {transform_indices = @transform_4, window_bounds = array<i64: 1, 8, 8>}]} {
    %c0 = arith.constant 0 : index
    %c0_0 = arith.constant 0 : index
    %c0_1 = arith.constant 0 : index
    %0 = vector.load %arg2[%c0, %c0_0, %c0_1] : memref<1x8x32xbf16, #tpu.memory_space<vmem>>, vector<1x8x32xbf16>
    %1 = vector.shape_cast %0 : vector<1x8x32xbf16> to vector<8x32xbf16>
    %c0_2 = arith.constant 0 : index
    %c0_3 = arith.constant 0 : index
    %c0_4 = arith.constant 0 : index
    %2 = vector.load %arg3[%c0_2, %c0_3, %c0_4] : memref<1x8x32xbf16, #tpu.memory_space<vmem>>, vector<1x8x32xbf16>
    %3 = vector.shape_cast %2 : vector<1x8x32xbf16> to vector<8x32xbf16>
    %cst = arith.constant dense<0.000000e+00> : vector<8x8xf32>
    %4 = tpu.matmul %1, %3, %cst {dimension_numbers = #tpu.dot_dimension_numbers<[1], [1], [0], [0], [0, 0, 1, 0], [], []>} : vector<8x32xbf16>, vector<8x32xbf16>, vector<8x8xf32> -> vector<8x8xf32>
    %cst_5 = arith.constant dense<0xFF800000> : vector<8xf32>
    %5 = vector.multi_reduction <maximumf>, %4, %cst_5 [1] : vector<8x8xf32> to vector<8xf32>
    %6 = vector.shape_cast %5 : vector<8xf32> to vector<8x1xf32>
    %7 = vector.broadcast %6 : vector<8x1xf32> to vector<8x8xf32>
    %8 = arith.subf %4, %7 : vector<8x8xf32>
    %9 = math.exp %8 : vector<8x8xf32>
    %cst_6 = arith.constant dense<0.000000e+00> : vector<8xf32>
    %10 = vector.multi_reduction <add>, %9, %cst_6 [1] : vector<8x8xf32> to vector<8xf32>
    %11 = vector.shape_cast %10 : vector<8xf32> to vector<8x1xf32>
    %12 = tpu.reciprocal %11 : vector<8x1xf32> -> vector<8x1xf32>
    %13 = vector.broadcast %12 : vector<8x1xf32> to vector<8x8xf32>
    %14 = arith.mulf %9, %13 : vector<8x8xf32>
    %15 = arith.truncf %14 : vector<8x8xf32> to vector<8x8xbf16>
    %c0_7 = arith.constant 0 : index
    %c0_8 = arith.constant 0 : index
    %c0_9 = arith.constant 0 : index
    %16 = vector.load %arg4[%c0_7, %c0_8, %c0_9] : memref<1x8x32xbf16, #tpu.memory_space<vmem>>, vector<1x8x32xbf16>
    %17 = vector.shape_cast %16 : vector<1x8x32xbf16> to vector<8x32xbf16>
    %cst_10 = arith.constant dense<0.000000e+00> : vector<8x32xf32>
    %18 = tpu.matmul %15, %17, %cst_10 {dimension_numbers = #tpu.dot_dimension_numbers<[1], [0], [0], [1], [0, 0, 1, 1], [], []>} : vector<8x8xbf16>, vector<8x32xbf16>, vector<8x32xf32> -> vector<8x32xf32>
    %c0_11 = arith.constant 0 : index
    %c0_12 = arith.constant 0 : index
    %c0_13 = arith.constant 0 : index
    %19 = vector.load %arg6[%c0_11, %c0_12, %c0_13] : memref<1x8x8xf32, #tpu.memory_space<vmem>>, vector<1x8x8xf32>
    %20 = vector.shape_cast %19 : vector<1x8x8xf32> to vector<8x8xf32>
    %21 = vector.shape_cast %14 : vector<8x8xf32> to vector<1x8x8xf32>
    tpu.vector_store %arg6[%c0_11, %c0_12, %c0_13], %21 {strides = array<i32>} : memref<1x8x8xf32, #tpu.memory_space<vmem>>, vector<1x8x8xf32>,
    %c0_14 = arith.constant 0 : index
    %c0_15 = arith.constant 0 : index
    %c0_16 = arith.constant 0 : index
    %22 = vector.load %arg5[%c0_14, %c0_15, %c0_16] : memref<1x8x32xf32, #tpu.memory_space<vmem>>, vector<1x8x32xf32>
    %23 = vector.shape_cast %22 : vector<1x8x32xf32> to vector<8x32xf32>
    %24 = vector.shape_cast %18 : vector<8x32xf32> to vector<1x8x32xf32>
    tpu.vector_store %arg5[%c0_14, %c0_15, %c0_16], %24 {strides = array<i32>} : memref<1x8x32xf32, #tpu.memory_space<vmem>>, vector<1x8x32xf32>,
    return
  }
  func.func @transform_0(%arg0: i32, %arg1: i32) -> (i32, i32, i32) {
    %c0_i32 = arith.constant 0 : i32
    %c0_i32_0 = arith.constant 0 : i32
    return %arg0, %arg1, %c0_i32 : i32, i32, i32
  }
  func.func @transform_1(%arg0: i32, %arg1: i32) -> (i32, i32, i32) {
    %c0_i32 = arith.constant 0 : i32
    %c0_i32_0 = arith.constant 0 : i32
    %c0_i32_1 = arith.constant 0 : i32
    return %arg0, %c0_i32, %c0_i32_0 : i32, i32, i32
  }
  func.func @transform_2(%arg0: i32, %arg1: i32) -> (i32, i32, i32) {
    %c0_i32 = arith.constant 0 : i32
    %c0_i32_0 = arith.constant 0 : i32
    %c0_i32_1 = arith.constant 0 : i32
    return %arg0, %c0_i32, %c0_i32_0 : i32, i32, i32
  }
  func.func @transform_3(%arg0: i32, %arg1: i32) -> (i32, i32, i32) {
    %c0_i32 = arith.constant 0 : i32
    %c0_i32_0 = arith.constant 0 : i32
    return %arg0, %arg1, %c0_i32 : i32, i32, i32
  }
  func.func @transform_4(%arg0: i32, %arg1: i32) -> (i32, i32, i32) {
    %c0_i32 = arith.constant 0 : i32
    %c0_i32_0 = arith.constant 0 : i32
    return %arg0, %arg1, %c0_i32 : i32, i32, i32
  }
}

module attributes {stable_mosaic.version = 11 : i64} {
  func.func @_sdpa_kernel(%arg0: i32, %arg1: i32, %arg2: memref<1x8x32xbf16, #tpu.memory_space<vmem>>, %arg3: memref<1x8x32xbf16, #tpu.memory_space<vmem>>, %arg4: memref<1x8x32xbf16, #tpu.memory_space<vmem>>, %arg5: memref<1x8x32xf32, #tpu.memory_space<vmem>>, %arg6: memref<1x8x8xf32, #tpu.memory_space<vmem>>) attributes {dimension_semantics = [#tpu.dimension_semantics<parallel>, #tpu.dimension_semantics<parallel>], iteration_bounds = array<i64: 2, 1>, scalar_prefetch = 0 : i64, scratch_operands = 0 : i64, tpu.core_type = #tpu.core_type<tc>, window_params = [{transform_indices = @transform_0, window_bounds = array<i64: 1, 8, 32>}, {transform_indices = @transform_1, window_bounds = array<i64: 1, 8, 32>}, {transform_indices = @transform_2, window_bounds = array<i64: 1, 8, 32>}, {transform_indices = @transform_3, window_bounds = array<i64: 1, 8, 32>}, {transform_indices = @transform_4, window_bounds = array<i64: 1, 8, 8>}]} {
    %c0 = arith.constant 0 : index
    %c0_0 = arith.constant 0 : index
    %c0_1 = arith.constant 0 : index
    %0 = vector.load %arg2[%c0, %c0_0, %c0_1] : memref<1x8x32xbf16, #tpu.memory_space<vmem>>, vector<1x8x32xbf16>
    %1 = vector.shape_cast %0 : vector<1x8x32xbf16> to vector<8x32xbf16>
    %c0_2 = arith.constant 0 : index
    %c0_3 = arith.constant 0 : index
    %c0_4 = arith.constant 0 : index
    %2 = vector.load %arg3[%c0_2, %c0_3, %c0_4] : memref<1x8x32xbf16, #tpu.memory_space<vmem>>, vector<1x8x32xbf16>
    %3 = vector.shape_cast %2 : vector<1x8x32xbf16> to vector<8x32xbf16>
    %cst = arith.constant dense<0.000000e+00> : vector<8x8xf32>
    %4 = tpu.matmul %1, %3, %cst {dimension_numbers = #tpu.dot_dimension_numbers<[1], [1], [0], [0], [0, 0, 1, 0], [], []>} : vector<8x32xbf16>, vector<8x32xbf16>, vector<8x8xf32> -> vector<8x8xf32>
    %cst_5 = arith.constant dense<0xFF800000> : vector<8xf32>
    %5 = vector.multi_reduction <maximumf>, %4, %cst_5 [1] : vector<8x8xf32> to vector<8xf32>
    %6 = vector.shape_cast %5 : vector<8xf32> to vector<8x1xf32>
    %7 = vector.broadcast %6 : vector<8x1xf32> to vector<8x8xf32>
    %8 = arith.subf %4, %7 : vector<8x8xf32>
    %9 = math.exp %8 : vector<8x8xf32>
    %cst_6 = arith.constant dense<0.000000e+00> : vector<8xf32>
    %10 = vector.multi_reduction <add>, %9, %cst_6 [1] : vector<8x8xf32> to vector<8xf32>
    %11 = vector.shape_cast %10 : vector<8xf32> to vector<8x1xf32>
    %12 = tpu.reciprocal %11 : vector<8x1xf32> -> vector<8x1xf32>
    %13 = vector.broadcast %12 : vector<8x1xf32> to vector<8x8xf32>
    %14 = arith.mulf %9, %13 : vector<8x8xf32>
    %15 = arith.truncf %14 : vector<8x8xf32> to vector<8x8xbf16>
    %c0_7 = arith.constant 0 : index
    %c0_8 = arith.constant 0 : index
    %c0_9 = arith.constant 0 : index
    %16 = vector.load %arg4[%c0_7, %c0_8, %c0_9] : memref<1x8x32xbf16, #tpu.memory_space<vmem>>, vector<1x8x32xbf16>
    %17 = vector.shape_cast %16 : vector<1x8x32xbf16> to vector<8x32xbf16>
    %cst_10 = arith.constant dense<0.000000e+00> : vector<8x32xf32>
    %18 = tpu.matmul %15, %17, %cst_10 {dimension_numbers = #tpu.dot_dimension_numbers<[1], [0], [0], [1], [0, 0, 1, 1], [], []>} : vector<8x8xbf16>, vector<8x32xbf16>, vector<8x32xf32> -> vector<8x32xf32>
    %c0_11 = arith.constant 0 : index
    %c0_12 = arith.constant 0 : index
    %c0_13 = arith.constant 0 : index
    %19 = vector.load %arg6[%c0_11, %c0_12, %c0_13] : memref<1x8x8xf32, #tpu.memory_space<vmem>>, vector<1x8x8xf32>
    %20 = vector.shape_cast %19 : vector<1x8x8xf32> to vector<8x8xf32>
    %21 = vector.shape_cast %14 : vector<8x8xf32> to vector<1x8x8xf32>
    tpu.vector_store %arg6[%c0_11, %c0_12, %c0_13], %21 {strides = array<i32>} : memref<1x8x8xf32, #tpu.memory_space<vmem>>, vector<1x8x8xf32>,
    %c0_14 = arith.constant 0 : index
    %c0_15 = arith.constant 0 : index
    %c0_16 = arith.constant 0 : index
    %22 = vector.load %arg5[%c0_14, %c0_15, %c0_16] : memref<1x8x32xf32, #tpu.memory_space<vmem>>, vector<1x8x32xf32>
    %23 = vector.shape_cast %22 : vector<1x8x32xf32> to vector<8x32xf32>
    %24 = vector.shape_cast %18 : vector<8x32xf32> to vector<1x8x32xf32>
    tpu.vector_store %arg5[%c0_14, %c0_15, %c0_16], %24 {strides = array<i32>} : memref<1x8x32xf32, #tpu.memory_space<vmem>>, vector<1x8x32xf32>,
    return
  }
  func.func @transform_0(%arg0: i32, %arg1: i32) -> (i32, i32, i32) {
    %c0_i32 = arith.constant 0 : i32
    %c0_i32_0 = arith.constant 0 : i32
    return %arg0, %arg1, %c0_i32 : i32, i32, i32
  }
  func.func @transform_1(%arg0: i32, %arg1: i32) -> (i32, i32, i32) {
    %c0_i32 = arith.constant 0 : i32
    %c0_i32_0 = arith.constant 0 : i32
    %c0_i32_1 = arith.constant 0 : i32
    return %arg0, %c0_i32, %c0_i32_0 : i32, i32, i32
  }
  func.func @transform_2(%arg0: i32, %arg1: i32) -> (i32, i32, i32) {
    %c0_i32 = arith.constant 0 : i32
    %c0_i32_0 = arith.constant 0 : i32
    %c0_i32_1 = arith.constant 0 : i32
    return %arg0, %c0_i32, %c0_i32_0 : i32, i32, i32
  }
  func.func @transform_3(%arg0: i32, %arg1: i32) -> (i32, i32, i32) {
    %c0_i32 = arith.constant 0 : i32
    %c0_i32_0 = arith.constant 0 : i32
    return %arg0, %arg1, %c0_i32 : i32, i32, i32
  }
  func.func @transform_4(%arg0: i32, %arg1: i32) -> (i32, i32, i32) {
    %c0_i32 = arith.constant 0 : i32
    %c0_i32_0 = arith.constant 0 : i32
    return %arg0, %arg1, %c0_i32 : i32, i32, i32
  }
}

</mosaic_0001>

<bundles_post_ra>
// kernel: tpu_custom_call.1
= control target key start
LH: loop header
LB: loop body
LE: loop exit
PB: predicated region body
PF: predicated region fallthrough
CT: control target
= control target key end

     0   :  { %10 = vsyncpa [#allocation3], 0  ;;  %s1214_s0 = inlined_call_operand.hbm [shape: bf16[2,8,32], index: 0, kind: input, shape index: {}]   ;;  %s1215_s1 = inlined_call_operand.hbm [shape: bf16[2,8,32], index: 1, kind: input, shape index: {}]   ;;  %s1216_s2 = inlined_call_operand.hbm [shape: bf16[2,8,32], index: 2, kind: input, shape index: {}]   ;;  %s1217_s3 = inlined_call_operand.hbm [shape: f32[2,8,32], index: 3, kind: output, shape index: {0}]   ;;  %s1218_s4 = inlined_call_operand.hbm [shape: f32[2,8,8], index: 4, kind: output, shape index: {1}]  }
   0x1   :  { %12 = vsyncpa [#allocation3 + $0x1], 0 }
   0x2   :  { %13 = vsyncpa [#allocation6], 0 }
   0x3   :  { %14 = vsyncpa [#allocation4], 0 }
   0x4   :  { %16 = vsyncpa [#allocation4 + $0x1], 0 }
   0x5   :  { %17 = vsyncpa [#allocation10], 0 }
   0x6   :  { %19 = vsyncpa [#allocation10 + $0x1], 0  ;;  %s929_s15 = smov 0   ;;  %s931_s16 = smov 0  }
   0x7   :  { %s933_s17 = smov 0   ;;  %s935_s18 = smov 0  }
   0x8   :  { %s937_s19 = smov 0   ;;  %s939_s20 = smov 0  }
   0x9 LB: > { %s565_s21 = sadd.s32 4294967295, %s895_s20   ;;  %s566_s22 = sadd.s32 4294967294, %s895_s20   ;;  %s895_s20 = sphi %s939_s20, %s25_s20   ;;  %s891_s19 = sphi %s937_s19, %s1238_s19   ;;  %s887_s18 = sphi %s935_s18, %s1237_s18   ;;  %s883_s17 = sphi %s933_s17, %s1236_s17   ;;  %s879_s16 = sphi %s931_s16, %s1235_s16   ;;  %s875_s15 = sphi %s929_s15, %s1234_s15  }
   0xa   : > { %p59_p0 = scmp.ne.s32.totalorder %s879_s16, %s875_s15  ;;  %p60_p1 = scmp.eq.s32.totalorder %s565_s21, 0 }
   0xb   : > { %p963_p2 = scmp.eq.s32.totalorder %s565_s21, 1  ;;  %p143_p3 = scmp.eq.s32.totalorder %s566_s22, 1 }
   0xc   : > { %p967_p4 = por %p60_p1, %p59_p0  ;;  %p567_p5 = scmp.ge.s32.totalorder %s895_s20, 1 }
   0xd   : > { %s1222_s23 = scalar_select %p963_p2, 1, 0 }
   0xe   : > { %s1223_s24 = scalar_select %p967_p4, 1, 0 }
   0xf   : > { %p972_p6 = por %p143_p3, %p59_p0  ;;  %p178_p7 = scmp.lt.s32.totalorder %s895_s20, 3 }
  0x10   : > { %s568_s26 = sshll.u32 %s887_s18, 6  ;;  %s897_s5 = smov [#allocation5]  }
  0x11   : > { %s1224_s25 = scalar_select %p972_p6, 1, 0 }
  0x12   : > { %p978_p8 = pnand %p567_p5, %p178_p7  ;;  %s985_s30 = scalar_lea.hbm %s1215_s1, %s568_s26 }
  0x13   : > { %s193_s6 = sshll.u32 %s897_s5, 4  ;;  %s993_s9 = scalar_lea.hbm %s1216_s2, %s568_s26  ;;  %s194_s6 = int_to_ptr.vmem [resolvable:$true] %s193_s6 }
  0x14   : > { %s1225_s27 = scalar_select %p978_p8, 1, 0 }
  0x15   : > { %p611_p10 = pneg %p978_p8  ;;  %s898_s11 = smov [#allocation7]  }
  0x16   : > { %s206_s12 = sshll.u32 %s898_s11, 4  ;;  %s687_s13 = scalar_lea.hbm %s985_s30, 64  ;;  %s1001_s12 = int_to_ptr.vmem [resolvable:$true] %s206_s12 }
  0x17   : > { %p997_p11 = pnand %p611_p10, %p967_p4  ;;  %p688_p12 = scmp.ne.s32.totalorder %s985_s30, %s687_s13 }
  0x18   : > { %s692_s22 = scalar_lea.hbm %s1215_s1, 128  ;;  %p693_p3 = scmp.lt.u32.totalorder %s985_s30, %s1215_s1 }
  0x19   : > { %p689_p13 = pneg %p997_p11  ;;  %p694_p5 = scmp.lt.u32.totalorder %s692_s22, %s687_s13 }
  0x1a   : > { %p696_p10 = scmp.lt.u32.totalorder %s687_s13, %s985_s30 }
  0x1b   : > { %p690_p0 = pnand %p689_p13, %p688_p12  ;;  %p695_p7 = por %p694_p5, %p693_p3 }
  0x1d   : > { %p691_p1 = pneg %p690_p0  ;;  %p697_p9 = por %p696_p10, %p695_p7 }
  0x1f   : > { %p698_p6 = pnand %p697_p9, %p691_p1 }
  0x21   : > { %701 = shalt.err (!%p698_p6)
}
  0x22   : > { %s702_s29 = scalar_lea.vmem %s194_s6, 64  ;;  %p710_p8 = scmp.lt.s32.totalorder %s194_s6, %s194_s6 }
  0x23   : > { %p703_p4 = scmp.ne.s32.totalorder %s194_s6, %s702_s29  ;;  %p711_p2 = scmp.lt.s32.totalorder %s702_s29, %s702_s29 }
  0x25   : > { %p705_p12 = pnand %p703_p4, %p689_p13  ;;  %p712_p3 = por %p711_p2, %p710_p8 }
  0x27   : > { %p706_p0 = pneg %p705_p12 }
  0x29   : > { %p713_p5 = pnand %p712_p3, %p706_p0 }
  0x2b   : > { %716 = shalt.err (!%p713_p5)
}
  0x2c   : > { %614 = dma.hbm_to_vmem [thread:$0]  (!%p997_p11), %s985_s30, 64, %s194_s6, [#allocation6]  }
  0x2d   : > { %s717_s5 = scalar_lea.hbm %s993_s9, 64  ;;  %s722_s11 = scalar_lea.hbm %s1216_s2, 128 }
  0x2e   : > { %p718_p6 = scmp.ne.s32.totalorder %s993_s9, %s717_s5  ;;  %p723_p2 = scmp.lt.u32.totalorder %s993_s9, %s1216_s2 }
  0x2f   : > { %p724_p8 = scmp.lt.u32.totalorder %s722_s11, %s717_s5  ;;  %p726_p7 = scmp.lt.u32.totalorder %s717_s5, %s993_s9 }
  0x30   : > { %p720_p4 = pnand %p718_p6, %p689_p13 }
  0x31   : > { %p725_p1 = por %p724_p8, %p723_p2 }
  0x32   : > { %p721_p9 = pneg %p720_p4 }
  0x33   : > { %p727_p10 = por %p726_p7, %p725_p1 }
  0x35   : > { %p728_p12 = pnand %p727_p10, %p721_p9 }
  0x37   : > { %731 = shalt.err (!%p728_p12)
}
  0x38   : > { %s732_s30 = scalar_lea.vmem %s1001_s12, 64  ;;  %p740_p6 = scmp.lt.s32.totalorder %s1001_s12, %s1001_s12 }
  0x39   : > { %p733_p0 = scmp.ne.s32.totalorder %s1001_s12, %s732_s30  ;;  %p741_p4 = scmp.lt.s32.totalorder %s732_s30, %s732_s30 }
  0x3b   : > { %p735_p3 = pnand %p733_p0, %p689_p13  ;;  %p742_p2 = por %p741_p4, %p740_p6 }
  0x3d   : > { %p736_p5 = pneg %p735_p3 }
  0x3f   : > { %p743_p8 = pnand %p742_p2, %p736_p5 }
  0x41   : > { %746 = shalt.err (!%p743_p8)
}
  0x42   : > { %617 = dma.hbm_to_vmem [thread:$0]  (!%p997_p11), %s993_s9, 64, %s1001_s12, [#allocation6]  }
  0x43   : > { %s37_s6 = sadd.s32 1, %s891_s19  ;;  %s46_s21 = sadd.s32 1, %s883_s17 }
  0x44   : > { %p39_p13 = scmp.ge.s32.totalorder %s37_s6, 2  ;;  %p53_p9 = scmp.ne.s32.totalorder %s883_s17, %s879_s16 }
  0x45   : > { %p54_p1 = scmp.eq.s32.totalorder %s895_s20, 0  ;;  %p629_p7 = scmp.lt.s32.totalorder %s895_s20, 2 }
  0x46   : > { %s1240_s6 = smov (%p39_p13, %s37_s6), 0  ;;  %p1227_p12 = scmp.ne.s32.totalorder %s1222_s23, 0 }
  0x47   : > { %p55_p10 = por %p54_p1, %p53_p9  ;;  %s41_s22 = ssub.s32 %s891_s19, %s1240_s6 }
  0x48   : > { %p1058_p0 = por %p1227_p12, %p53_p9  ;;  %s217_s26 = sand.u32 1, %s883_s17  }
  0x49   : > { %p44_p3 = scmp.eq.s32.totalorder %s41_s22, 0  ;;  %s571_s9 = sshll.u32 %s217_s26, 2 }
  0x4a   : > { %s572_s12 = sshll.u32 %s891_s19, 6  ;;  %s221_s23 = scalar_lea.vmem [#allocation2], %s571_s9 }
  0x4b   : > { %s1067_s28 = scalar_select %p44_p3, %s883_s17, %s46_s21  }
  0x4c   : > { %s1072_s7 = scalar_lea.hbm %s1214_s0, %s572_s12  ;;  %s229_s8 = sshll.u32 %s221_s23, 4  ;;  %s1080_s8 = int_to_ptr.vmem [resolvable:$true] %s229_s8 }
  0x4d   : > { %p1076_p11 = pnand %p629_p7, %p55_p10  ;;  %s218_s13 = scalar_lea.sflag [#allocation3], %s217_s26 }
  0x4e   : > { %s747_s14 = scalar_lea.hbm %s1072_s7, 64  ;;  %s752_s22 = scalar_lea.hbm %s1214_s0, 128 }
  0x4f   : > { %p748_p5 = scmp.ne.s32.totalorder %s1072_s7, %s747_s14  ;;  %p749_p6 = pneg %p1076_p11 }
  0x50   : > { %p753_p8 = scmp.lt.u32.totalorder %s1072_s7, %s1214_s0  ;;  %p754_p13 = scmp.lt.u32.totalorder %s752_s22, %s747_s14 }
  0x51   : > { %p750_p4 = pnand %p749_p6, %p748_p5  ;;  %p756_p1 = scmp.lt.u32.totalorder %s747_s14, %s1072_s7 }
  0x52   : > { %p755_p9 = por %p754_p13, %p753_p8 }
  0x53   : > { %p751_p2 = pneg %p750_p4 }
  0x54   : > { %p757_p7 = por %p756_p1, %p755_p9 }
  0x56   : > { %p758_p10 = pnand %p757_p7, %p751_p2 }
  0x58   : > { %761 = shalt.err (!%p758_p10)
}
  0x59   : > { %s762_s26 = scalar_lea.vmem %s1080_s8, 64  ;;  %s899_s29 = smov [#allocation2]  }
  0x5a   : > { %p763_p12 = scmp.ne.s32.totalorder %s1080_s8, %s762_s26  ;;  %s767_s5 = sshll.u32 %s899_s29, 4  ;;  %s768_s5 = int_to_ptr.vmem [resolvable:$false] %s767_s5 }
  0x5b   : > { %s769_s23 = scalar_lea.vmem %s768_s5, 128  ;;  %p770_p4 = scmp.lt.s32.totalorder %s1080_s8, %s768_s5 }
  0x5c   : > { %p765_p3 = pnand %p763_p12, %p749_p6  ;;  %p771_p8 = scmp.lt.s32.totalorder %s769_s23, %s762_s26 }
  0x5e   : > { %p766_p5 = pneg %p765_p3  ;;  %p772_p13 = por %p771_p8, %p770_p4 }
  0x60   : > { %p773_p9 = pnand %p772_p13, %p766_p5 }
  0x62   : > { %776 = shalt.err (!%p773_p9)
}
  0x63   : > { %621 = dma.hbm_to_vmem [thread:$0]  (!%p1076_p11), %s1072_s7, 64, %s1080_s8, %s218_s13  }
  0x64   : > { %p1230_p2 = scmp.ne.s32.totalorder %s1225_s27, 0 }
  0x65   : > { %s1110_s14 = sand.u32 (!%p1230_p2), 1, %s879_s16   ;;  %p1231_p6 = scmp.ne.s32.totalorder (!%p1230_p2), %s1223_s24, 0 }
  0x66   : > { %238 = sbr.rel (%p1230_p2) target bundleno = 877 (0x36d), region = 32  ;;  %s574_s30 = sshll.u32 (!%p1230_p2), %s1110_s14, 2 }
  0x67   : > { %s241_s21 = scalar_lea.sflag (!%p1230_p2), [#allocation3], %s1110_s14  ;;  %s244_s22 = scalar_lea.vmem (!%p1230_p2), [#allocation2], %s574_s30 }
  0x6d   : > { %858 = dma.done.wait (%p1231_p6), %s241_s21, 64  }
  0x6e   : > { %860 = vsyncadd (%p1231_p6), %s241_s21, 4294967232 }
  0x6f   : > { %862 = dma.done.wait (%p1231_p6), [#allocation6], 128  }
  0x70   : > { %864 = vsyncadd (%p1231_p6), [#allocation6], 4294967168  ;;  %v900_v0 = vmov 0.0   ;;  %vm901_vm0 = vmmov 0   ;;  %vm285_vm1 = vcmask 261120   ;;  %vm332_vm2 = vcmask 64512  }
  0x71   : > { %589 = vmatprep.subr.bf16.mxu0 %v900_v0  ;;  %591 = vmatprep.mubr.msk.bf16.mxu0 %vm901_vm0, %v900_v0  ;;  %v284_v1 = vld [vmem:[#allocation5] sm:$0xf]  ;;  %v283_v3 = vld [vmem:[%s244_s22] sm:$0xf]  ;;  %v345_v14 = vld [vmem:[#allocation7] sm:$0xf] }
  0x72   : > { %595 = vmatprep.subr.bf16.mxu1 %v900_v0  ;;  %597 = vmatprep.mubr.msk.bf16.mxu1 %vm901_vm0, %v900_v0  ;;  %v290_v2 = vsel %vm285_vm1, %v284_v1, 0  ;;  %vm349_vm3 = vcmask 1043456   ;;  %s575_s24 = sshll.u32 %s1110_s14, 3  ;;  %s581_s7 = sshll.u32 %s887_s18, 7 }
  0x73   : > { %590 = vmatpush3.bf16.xpose.msra.mxu0 %v290_v2  ;;  %v351_v15 = vsel %vm349_vm3, %v345_v14, 0  ;;  %s281_s27 = scalar_lea.vmem [#allocation9], %s575_s24  ;;  %s1137_s13 = scalar_lea.hbm %s1218_s4, %s581_s7 }
  0x74   : > { %596 = vmatpush3.bf16.msra.mxu1 %v351_v15  ;;  %s429_s9 = sshll.u32 %s281_s27, 4  ;;  %s401_s12 = scalar_lea.sflag [#allocation10], %s1110_s14  ;;  %s430_s9 = int_to_ptr.vmem [resolvable:$true] %s429_s9 }
  0x75   : > { %s777_s26 = scalar_lea.vmem %s430_s9, 128  ;;  %s902_s29 = smov [#allocation9]  }
  0x76   : > { %p778_p11 = scmp.ne.s32.totalorder %s430_s9, %s777_s26  ;;  %s781_s5 = sshll.u32 %s902_s29, 4  ;;  %s782_s5 = int_to_ptr.vmem [resolvable:$false] %s781_s5 }
  0x77   : > { %s783_s23 = scalar_lea.vmem %s782_s5, 256  ;;  %p784_p10 = scmp.lt.s32.totalorder %s430_s9, %s782_s5 }
  0x78   : > { %p779_p1 = pnand %p778_p11, %p1058_p0  ;;  %p785_p12 = scmp.lt.s32.totalorder %s783_s23, %s777_s26 }
  0x7a   : > { %592 = vmatmul.mubr.msk.bf16.vlgmr.msra.gmra.mrb[0].mxu0 %vm285_vm1, %v283_v3  ;;  %p780_p7 = pneg %p779_p1  ;;  %p786_p3 = por %p785_p12, %p784_p10 }
  0x7c   : > { %p787_p5 = pnand %p786_p3, %p780_p7 }
 0x14d   : > { %v326_v4 = vpop.f32.mrb[0].mxu0 }
 0x14e   : > { %v593_v5 = vpop.f32.mrb[1].mxu0  ;;  %v333_v6 = vsel %vm332_vm2, %v326_v4, -inf }
 0x14f   : > { %334 = vmax.xlane.f32.xlu0 %v333_v6  ;;  %v329_v7 = vpop.f32.mrb[2].mxu0 }
 0x150   : > { %v594_v8 = vpop.f32.mrb[3].mxu0 }
 0x1dc   : > { %v335_v9 = vpop.xlane.xlu0 %334 }
 0x1dd   : > { %v336_v10 = vsub.f32 %v326_v4, %v335_v9 }
 0x1df   : > { %v337_v11 = vmul.f32 1.442695, %v336_v10 }
 0x1e1   : > { %683 = vpow2.f32 %v337_v11 }
 0x1eb   : > { %v684_v12 = vpop.eup %683 }
 0x1ec   : > { %v339_v13 = vsel %vm332_vm2, %v684_v12, 0.0 }
 0x1ed   : > { %340 = vadd.xlane.f32.xlu0 %v339_v13 }
 0x27a   : > { %v341_v16 = vpop.xlane.xlu0 %340 }
 0x27b   : > { %685 = vrcp.f32 %v341_v16 }
 0x285   : > { %v686_v17 = vpop.eup %685 }
 0x286   : > { %v343_v18 = vmul.f32 %v686_v17, %v684_v12 }
 0x288   : > { %v344_v19 = vpack.c.bf16 %v343_v18, %v343_v18  ;;  %393 = vst.msk [vmem:[%s281_s27] sm:$0xff] %vm332_vm2, %v343_v18 }
 0x28a   : > { %598 = vmatmul.mubr.msk.bf16.vlgmr.msra.gmra.mrb[0].mxu1 %vm332_vm2, %v344_v19 }
 0x28b   : > { %790 = shalt.err (!%p787_p5)
}
 0x28c   : > { %s791_s30 = scalar_lea.hbm %s1137_s13, 128  ;;  %s795_s27 = scalar_lea.hbm %s1218_s4, 256 }
 0x28d   : > { %p792_p4 = scmp.ne.s32.totalorder %s1137_s13, %s791_s30  ;;  %p796_p9 = scmp.lt.u32.totalorder %s1137_s13, %s1218_s4 }
 0x28e   : > { %p797_p2 = scmp.lt.u32.totalorder %s795_s27, %s791_s30  ;;  %p799_p11 = scmp.lt.u32.totalorder %s791_s30, %s1137_s13 }
 0x28f   : > { %p793_p8 = pnand %p792_p4, %p1058_p0 }
 0x290   : > { %p798_p6 = por %p797_p2, %p796_p9 }
 0x291   : > { %p794_p13 = pneg %p793_p8 }
 0x292   : > { %p800_p1 = por %p799_p11, %p798_p6 }
 0x294   : > { %p801_p7 = pnand %p800_p1, %p794_p13 }
 0x296   : > { %804 = shalt.err (!%p801_p7)
}
 0x297   : > { %608 = dma.vmem_to_hbm [thread:$0]  (%p1058_p0), %s430_s9, 128, %s1137_s13, %s401_s12  }
 0x298   : > { %s274_s26 = scalar_lea.vmem [#allocation8], %s575_s24  ;;  %s1164_s21 = scalar_lea.hbm %s1217_s3, %s581_s7 }
 0x299   : > { %s415_s29 = sshll.u32 %s274_s26, 4  ;;  %s396_s13 = scalar_lea.sflag [#allocation4], %s1110_s14  ;;  %s1166_s29 = int_to_ptr.vmem [resolvable:$true] %s415_s29 }
 0x29a   : > { %s805_s9 = scalar_lea.vmem %s1166_s29, 128  ;;  %s903_s18 = smov [#allocation8]  }
 0x29b   : > { %p806_p10 = scmp.ne.s32.totalorder %s1166_s29, %s805_s9  ;;  %s809_s24 = sshll.u32 %s903_s18, 4  ;;  %s810_s24 = int_to_ptr.vmem [resolvable:$false] %s809_s24 }
 0x29c   : > { %s811_s7 = scalar_lea.vmem %s810_s24, 256  ;;  %p812_p5 = scmp.lt.s32.totalorder %s1166_s29, %s810_s24 }
 0x29d   : > { %p807_p12 = pnand %p806_p10, %p1058_p0  ;;  %p813_p4 = scmp.lt.s32.totalorder %s811_s7, %s805_s9 }
 0x29f   : > { %p808_p3 = pneg %p807_p12  ;;  %p814_p8 = por %p813_p4, %p812_p5 }
 0x2a1   : > { %p815_p13 = pnand %p814_p8, %p808_p3 }
 0x35d   : > { %v387_v20 = vpop.f32.mrb[0].mxu1 }
 0x35e   : > { %394 = vst.msk [vmem:[%s274_s26] sm:$0xff] %vm285_vm1, %v387_v20  ;;  %v599_v21 = vpop.f32.mrb[1].mxu1 }
 0x35f   : > { %v390_v22 = vpop.f32.mrb[2].mxu1 }
 0x360   : > { %818 = shalt.err (!%p815_p13)
}
 0x361   : > { %s819_s14 = scalar_lea.hbm %s1164_s21, 128  ;;  %s823_s22 = scalar_lea.hbm %s1217_s3, 256 }
 0x362   : > { %p820_p9 = scmp.ne.s32.totalorder %s1164_s21, %s819_s14  ;;  %p824_p11 = scmp.lt.u32.totalorder %s1164_s21, %s1217_s3 }
 0x363   : > { %p825_p1 = scmp.lt.u32.totalorder %s823_s22, %s819_s14  ;;  %p827_p10 = scmp.lt.u32.totalorder %s819_s14, %s1164_s21 }
 0x364   : > { %p821_p2 = pnand %p820_p9, %p1058_p0 }
 0x365   : > { %p826_p7 = por %p825_p1, %p824_p11 }
 0x366   : > { %p822_p6 = pneg %p821_p2 }
 0x367   : > { %p828_p12 = por %p827_p10, %p826_p7 }
 0x369   : > { %p829_p3 = pnand %p828_p12, %p822_p6 }
 0x36b   : > { %832 = shalt.err (!%p829_p3)
}
 0x36c   : > { %607 = dma.vmem_to_hbm [thread:$0]  (%p1058_p0), %s1166_s29, 128, %s1164_s21, %s396_s13   ;;  %v600_v23 = vpop.f32.mrb[3].mxu1 }
 0x36d PF: > { %s441_s11 = sand.u32 1, %s875_s15   ;;  %p1232_p5 = scmp.ne.s32.totalorder %s1224_s25, 0 }
 0x36e   : > { %p1233_p4 = scmp.ge.s32.totalorder %s895_s20, 2  ;;  %s442_s26 = scalar_lea.sflag [#allocation4], %s441_s11 }
 0x370   : > { %p623_p8 = pnand %p1233_p4, %p1232_p5 }
 0x372   : > { %866 = dma.done.wait (!%p623_p8), %s442_s26, 128  }
 0x373   : > { %868 = vsyncadd (!%p623_p8), %s442_s26, 4294967168  ;;  %s451_s5 = scalar_lea.sflag [#allocation10], %s441_s11 }
 0x374   : > { %870 = dma.done.wait (!%p623_p8), %s451_s5, 128  }
 0x375   : > { %872 = vsyncadd (!%p623_p8), %s451_s5, 4294967168  ;;  %s25_s20 = sadd.s32 1, %s895_s20   ;;  %s1234_s15 = smov %s879_s16 }
 0x376   : > { %p22_p13 = scmp.ge.s32.totalorder %s25_s20, 4   ;;  %s1235_s16 = smov %s883_s17 }
 0x377   : > { %s1236_s17 = smov %s1067_s28  ;;  %s1237_s18 = smov %s891_s19 }
 0x378   : > { %s1238_s19 = smov %s1240_s6  ;;  %24 = sbr.rel (!%p22_p13) target bundleno = 9 (0x9), region = 104 }
 0x37f   :  { %456 = vsyncpa [#allocation3], 1 }
 0x380   :  { %458 = vsyncpa [#allocation3 + $0x1], 1 }
 0x381   :  { %459 = vsyncpa [#allocation6], 1 }
 0x382   :  { %460 = vsyncpa [#allocation4], 1 }
 0x383   :  { %462 = vsyncpa [#allocation4 + $0x1], 1 }
 0x384   :  { %463 = vsyncpa [#allocation10], 1 }
 0x385   :  { %465 = vsyncpa [#allocation10 + $0x1], 1 }

// kernel: tpu_custom_call.1
= control target key start
LH: loop header
LB: loop body
LE: loop exit
PB: predicated region body
PF: predicated region fallthrough
CT: control target
= control target key end

     0   :  { %s1284_s0 = inlined_call_operand.hbm [shape: bf16[2,8,32], index: 0, kind: input, shape index: {}]   ;;  %s1285_s1 = inlined_call_operand.hbm [shape: bf16[2,8,32], index: 1, kind: input, shape index: {}]   ;;  %s1286_s2 = inlined_call_operand.hbm [shape: bf16[2,8,32], index: 2, kind: input, shape index: {}]   ;;  %s1287_s3 = inlined_call_operand.hbm [shape: f32[2,8,32], index: 3, kind: output, shape index: {0}]   ;;  %s1288_s4 = inlined_call_operand.hbm [shape: f32[2,8,8], index: 4, kind: output, shape index: {1}]  }
   0x1   :  { %1297 = sst [smem:[#allocation19_spill]] %s1285_s1 }
   0x2   :  { %10 = vsyncpa [#allocation3], 0 }
   0x3   :  { %12 = vsyncpa [#allocation3 + $0x1], 0 }
   0x4   :  { %13 = vsyncpa [#allocation6], 0 }
   0x5   :  { %15 = vsyncpa [#allocation6 + $0x1], 0 }
   0x6   :  { %16 = vsyncpa [#allocation4], 0 }
   0x7   :  { %18 = vsyncpa [#allocation4 + $0x1], 0 }
   0x8   :  { %19 = vsyncpa [#allocation10], 0 }
   0x9   :  { %21 = vsyncpa [#allocation10 + $0x1], 0  ;;  %s982_s15 = smov 0   ;;  %s984_s16 = smov 0  }
   0xa   :  { %s986_s17 = smov 0   ;;  %s988_s18 = smov 0  }
   0xb   :  { %s990_s19 = smov 0   ;;  %s992_s20 = smov 0  }
   0xc LB: > { %1298 = sst [smem:[#allocation15_spill]] %s944_s19  ;;  %s1013_s21 = sadd.s32 4294967295, %s948_s20   ;;  %s948_s20 = sphi %s992_s20, %s27_s20   ;;  %s944_s19 = sphi %s990_s19, %s1322_s19   ;;  %s940_s18 = sphi %s988_s18, %s1321_s18   ;;  %s936_s17 = sphi %s986_s17, %s1325_s17   ;;  %s932_s16 = sphi %s984_s16, %s1324_s16   ;;  %s928_s15 = sphi %s982_s15, %s1323_s15  }
   0xd   : > { %1299 = sst [smem:[#allocation16_spill]] %s948_s20  ;;  %s618_s22 = sadd.s32 4294967294, %s948_s20  }
   0xe   : > { %s39_s23 = sadd.s32 1, %s944_s19  ;;  %s48_s24 = sadd.s32 1, %s936_s17 }
   0xf   : > { %p41_p0 = scmp.ge.s32.totalorder %s39_s23, 2  ;;  %p55_p1 = scmp.ne.s32.totalorder %s936_s17, %s932_s16 }
  0x10   : > { %p56_p2 = scmp.eq.s32.totalorder %s948_s20, 0  ;;  %p61_p3 = scmp.ne.s32.totalorder %s932_s16, %s928_s15 }
  0x11   : > { %s1327_s23 = smov (%p41_p0, %s39_s23), 0  ;;  %p62_p5 = scmp.eq.s32.totalorder %s1013_s21, 0 }
  0x12   : > { %1300 = sst [smem:[#allocation17_spill]] %s1327_s23  ;;  %p1025_p4 = por %p56_p2, %p55_p1 }
  0x13   : > { %s43_s26 = ssub.s32 %s944_s19, %s1327_s23  ;;  %p139_p6 = scmp.eq.s32.totalorder %s1013_s21, 1 }
  0x14   : > { %p46_p7 = scmp.eq.s32.totalorder %s43_s26, 0  ;;  %p1033_p8 = por %p62_p5, %p61_p3 }
  0x15   : > { %p1037_p9 = por %p139_p6, %p55_p1  ;;  %p145_p10 = scmp.eq.s32.totalorder %s618_s22, 1 }
  0x16   : > { %s1302_s27 = scalar_select %p1033_p8, 1, 0 }
  0x17   : > { %s1303_s28 = scalar_select %p1037_p9, 1, 0 }
  0x18   : > { %s1042_s29 = scalar_select %p46_p7, %s936_s17, %s48_s24  }
  0x19   : > { %p1044_p11 = por %p145_p10, %p61_p3  ;;  %p684_p13 = scmp.lt.s32.totalorder %s948_s20, 2 }
  0x1a   : > { %1304 = sst [smem:[#allocation18_spill]] %s1042_s29  ;;  %s1289_s5 = sand.u32 1, %s936_s17  }
  0x1b   : > { %s1305_s30 = scalar_select %p1044_p11, 1, 0 }
  0x1c   : > { %s1053_s6 = sshll.u32 %s1289_s5, 2  ;;  %s1056_s7 = sshll.u32 %s944_s19, 6 }
  0x1d   : > { %p1060_p0 = pnand %p684_p13, %p1025_p4  ;;  %s212_s9 = sand.u32 1, %s948_s20  }
  0x1e   : > { %s1307_s1 = sld [smem:[#allocation19_spill]]  ;;  %s216_s13 = scalar_lea.vmem [#allocation5], %s1053_s6 }
  0x1f   : > { %s1306_s8 = scalar_select %p1060_p0, 1, 0 }
  0x20   : > { %s223_s14 = sshll.u32 %s216_s13, 4  ;;  %s1076_s22 = scalar_lea.sflag [#allocation6], %s212_s9  ;;  %s1073_s14 = int_to_ptr.vmem [resolvable:$true] %s223_s14 }
  0x21   : > { %p1082_p4 = pneg %p1060_p0 }
  0x24   : > { %s1069_s12 = scalar_lea.hbm %s1307_s1, %s1056_s7  ;;  %s745_s11 = scalar_lea.hbm %s1307_s1, 128 }
  0x25   : > { %s740_s24 = scalar_lea.hbm %s1069_s12, 64  ;;  %p746_p7 = scmp.lt.u32.totalorder %s1069_s12, %s1307_s1 }
  0x26   : > { %p741_p3 = scmp.ne.s32.totalorder %s1069_s12, %s740_s24  ;;  %p747_p10 = scmp.lt.u32.totalorder %s745_s11, %s740_s24 }
  0x27   : > { %p749_p12 = scmp.lt.u32.totalorder %s740_s24, %s1069_s12 }
  0x28   : > { %p743_p5 = pnand %p1082_p4, %p741_p3  ;;  %p748_p13 = por %p747_p10, %p746_p7 }
  0x2a   : > { %p744_p6 = pneg %p743_p5  ;;  %p750_p1 = por %p749_p12, %p748_p13 }
  0x2c   : > { %p751_p2 = pnand %p750_p1, %p744_p6 }
  0x2e   : > { %754 = shalt.err (!%p751_p2)
}
  0x2f   : > { %s755_s9 = scalar_lea.vmem %s1073_s14, 64  ;;  %s950_s26 = smov [#allocation5]  }
  0x30   : > { %p756_p3 = scmp.ne.s32.totalorder %s1073_s14, %s755_s9  ;;  %s760_s10 = sshll.u32 %s950_s26, 4  ;;  %s761_s10 = int_to_ptr.vmem [resolvable:$false] %s760_s10 }
  0x31   : > { %s762_s5 = scalar_lea.vmem %s761_s10, 128  ;;  %p763_p9 = scmp.lt.s32.totalorder %s1073_s14, %s761_s10 }
  0x32   : > { %p758_p5 = pnand %p756_p3, %p1082_p4  ;;  %p764_p8 = scmp.lt.s32.totalorder %s762_s5, %s755_s9 }
  0x34   : > { %p759_p11 = pneg %p758_p5  ;;  %p765_p7 = por %p764_p8, %p763_p9 }
  0x36   : > { %p766_p10 = pnand %p765_p7, %p759_p11 }
  0x38   : > { %769 = shalt.err (!%p766_p10)
}
  0x39   : > { %673 = dma.hbm_to_vmem [thread:$0]  (!%p1060_p0), %s1069_s12, 64, %s1073_s14, %s1076_s22  }
  0x3a   : > { %p1309_p12 = scmp.lt.s32.totalorder %s948_s20, 3  ;;  %p1310_p1 = scmp.ge.s32.totalorder %s948_s20, 1 }
  0x3b   : > { %s1118_s9 = scalar_lea.hbm %s1284_s0, %s1056_s7  ;;  %s197_s26 = scalar_lea.vmem [#allocation2], %s1053_s6 }
  0x3c   : > { %p1110_p2 = pnand %p1310_p1, %p1309_p12  ;;  %s205_s10 = sshll.u32 %s197_s26, 4  ;;  %s1121_s10 = int_to_ptr.vmem [resolvable:$true] %s205_s10 }
  0x3d   : > { %s1127_s5 = scalar_lea.hbm %s1286_s2, %s1056_s7  ;;  %s1312_s1 = sand.u32 1, %s936_s17  }
  0x3e   : > { %s1311_s24 = scalar_select %p1110_p2, 1, 0 }
  0x3f   : > { %s194_s23 = scalar_lea.sflag [#allocation3], %s1312_s1  ;;  %s770_s19 = scalar_lea.hbm %s1118_s9, 64 }
  0x40   : > { %p771_p8 = scmp.ne.s32.totalorder %s1118_s9, %s770_s19  ;;  %s775_s29 = scalar_lea.hbm %s1284_s0, 128 }
  0x41   : > { %p776_p6 = scmp.lt.u32.totalorder %s1118_s9, %s1284_s0  ;;  %p777_p13 = scmp.lt.u32.totalorder %s775_s29, %s770_s19 }
  0x42   : > { %p773_p9 = pnand %p771_p8, %p1082_p4  ;;  %p779_p5 = scmp.lt.u32.totalorder %s770_s19, %s1118_s9 }
  0x43   : > { %p778_p3 = por %p777_p13, %p776_p6 }
  0x44   : > { %p774_p11 = pneg %p773_p9 }
  0x45   : > { %p780_p7 = por %p779_p5, %p778_p3 }
  0x47   : > { %p781_p10 = pnand %p780_p7, %p774_p11 }
  0x49   : > { %784 = shalt.err (!%p781_p10)
}
  0x4a   : > { %s785_s1 = scalar_lea.vmem %s1121_s10, 64  ;;  %s951_s7 = smov [#allocation2]  }
  0x4b   : > { %p786_p12 = scmp.ne.s32.totalorder %s1121_s10, %s785_s1  ;;  %s790_s12 = sshll.u32 %s951_s7, 4  ;;  %s791_s12 = int_to_ptr.vmem [resolvable:$false] %s790_s12 }
  0x4c   : > { %s792_s20 = scalar_lea.vmem %s791_s12, 128  ;;  %p793_p9 = scmp.lt.s32.totalorder %s1121_s10, %s791_s12 }
  0x4d   : > { %p788_p1 = pnand %p786_p12, %p1082_p4  ;;  %p794_p2 = scmp.lt.s32.totalorder %s792_s20, %s785_s1 }
  0x4f   : > { %p789_p8 = pneg %p788_p1  ;;  %p795_p6 = por %p794_p2, %p793_p9 }
  0x51   : > { %p796_p13 = pnand %p795_p6, %p789_p8 }
  0x53   : > { %799 = shalt.err (!%p796_p13)
}
  0x54   : > { %670 = dma.hbm_to_vmem [thread:$0]  (!%p1060_p0), %s1118_s9, 64, %s1121_s10, %s194_s23  }
  0x55   : > { %s234_s19 = scalar_lea.vmem [#allocation7], %s1053_s6  ;;  %s800_s14 = scalar_lea.hbm %s1127_s5, 64 }
  0x56   : > { %s241_s29 = sshll.u32 %s234_s19, 4  ;;  %p801_p11 = scmp.ne.s32.totalorder %s1127_s5, %s800_s14  ;;  %s242_s29 = int_to_ptr.vmem [resolvable:$true] %s241_s29 }
  0x57   : > { %s805_s26 = scalar_lea.hbm %s1286_s2, 128  ;;  %p806_p5 = scmp.lt.u32.totalorder %s1127_s5, %s1286_s2 }
  0x58   : > { %p803_p2 = pnand %p801_p11, %p1082_p4  ;;  %p807_p7 = scmp.lt.u32.totalorder %s805_s26, %s800_s14 }
  0x59   : > { %p809_p12 = scmp.lt.u32.totalorder %s800_s14, %s1127_s5 }
  0x5a   : > { %p804_p3 = pneg %p803_p2  ;;  %p808_p10 = por %p807_p7, %p806_p5 }
  0x5c   : > { %p810_p1 = por %p809_p12, %p808_p10 }
  0x5e   : > { %p811_p8 = pnand %p810_p1, %p804_p3 }
  0x60   : > { %814 = shalt.err (!%p811_p8)
}
  0x61   : > { %s815_s23 = scalar_lea.vmem %s242_s29, 64  ;;  %s952_s6 = smov [#allocation7]  }
  0x62   : > { %p816_p9 = scmp.ne.s32.totalorder %s242_s29, %s815_s23  ;;  %s820_s9 = sshll.u32 %s952_s6, 4  ;;  %s821_s9 = int_to_ptr.vmem [resolvable:$false] %s820_s9 }
  0x63   : > { %s822_s10 = scalar_lea.vmem %s821_s9, 128  ;;  %p823_p11 = scmp.lt.s32.totalorder %s242_s29, %s821_s9 }
  0x64   : > { %p818_p6 = pnand %p816_p9, %p1082_p4  ;;  %p824_p2 = scmp.lt.s32.totalorder %s822_s10, %s815_s23 }
  0x66   : > { %p819_p13 = pneg %p818_p6  ;;  %p825_p0 = por %p824_p2, %p823_p11 }
  0x68   : > { %p826_p5 = pnand %p825_p0, %p819_p13 }
  0x6a   : > { %829 = shalt.err (!%p826_p5)
}
  0x6b   : > { %p1313_p7 = scmp.ne.s32.totalorder %s1306_s8, 0  ;;  %p1314_p3 = scmp.ne.s32.totalorder %s1311_s24, 0 }
  0x6c   : > { %s1174_s25 = sand.u32 (!%p1314_p3), 1, %s932_s16   ;;  %p1315_p0 = scmp.ne.s32.totalorder (!%p1314_p3), %s1302_s27, 0 }
  0x6d   : > { %676 = dma.hbm_to_vmem [thread:$0]  (!%p1313_p7), %s1127_s5, 64, %s242_s29, %s1076_s22  }
  0x6e   : > { %250 = sbr.rel (%p1314_p3) target bundleno = 886 (0x376), region = 32  ;;  %s1177_s12 = sshll.u32 (!%p1314_p3), %s1174_s25, 2 }
  0x6f   : > { %s253_s20 = scalar_lea.sflag (!%p1314_p3), [#allocation3], %s1174_s25  ;;  %s256_s19 = scalar_lea.vmem (!%p1314_p3), [#allocation2], %s1177_s12 }
  0x75   : > { %911 = dma.done.wait (%p1315_p0), %s253_s20, 64  }
  0x76   : > { %913 = vsyncadd (%p1315_p0), %s253_s20, 4294967232  ;;  %s261_s8 = sand.u32 1, %s1013_s21   ;;  %s265_s24 = scalar_lea.vmem [#allocation5], %s1177_s12 }
  0x77   : > { %s262_s22 = scalar_lea.sflag [#allocation6], %s261_s8 }
  0x78   : > { %915 = dma.done.wait (%p1315_p0), %s262_s22, 128  }
  0x79   : > { %917 = vsyncadd (%p1315_p0), %s262_s22, 4294967168  ;;  %v953_v0 = vmov 0.0   ;;  %vm954_vm0 = vmmov 0   ;;  %vm317_vm1 = vcmask 261120   ;;  %v316_v1 = vld [vmem:[%s265_s24] sm:$0xf] }
  0x7a   : > { %645 = vmatprep.subr.bf16.mxu0 %v953_v0  ;;  %647 = vmatprep.mubr.msk.bf16.mxu0 %vm954_vm0, %v953_v0  ;;  %v322_v2 = vsel %vm317_vm1, %v316_v1, 0  ;;  %v315_v3 = vld [vmem:[%s256_s19] sm:$0xf]  ;;  %vm364_vm2 = vcmask 64512   ;;  %vm381_vm3 = vcmask 1043456   ;;  %s274_s21 = scalar_lea.vmem [#allocation7], %s1177_s12 }
  0x7b   : > { %651 = vmatprep.subr.bf16.mxu1 %v953_v0  ;;  %653 = vmatprep.mubr.msk.bf16.mxu1 %vm954_vm0, %v953_v0  ;;  %v377_v14 = vld [vmem:[%s274_s21] sm:$0xf]  ;;  %s631_s27 = sshll.u32 %s1174_s25, 3  ;;  %s637_s29 = sshll.u32 %s940_s18, 7 }
  0x7c   : > { %646 = vmatpush3.bf16.xpose.msra.mxu0 %v322_v2  ;;  %v383_v15 = vsel %vm381_vm3, %v377_v14, 0  ;;  %s313_s5 = scalar_lea.vmem [#allocation9], %s631_s27  ;;  %s1207_s13 = scalar_lea.hbm %s1288_s4, %s637_s29 }
  0x7d   : > { %652 = vmatpush3.bf16.msra.mxu1 %v383_v15  ;;  %s461_s26 = sshll.u32 %s313_s5, 4  ;;  %s433_s1 = scalar_lea.sflag [#allocation10], %s1174_s25  ;;  %s462_s26 = int_to_ptr.vmem [resolvable:$true] %s461_s26 }
  0x7e   : > { %s830_s7 = scalar_lea.vmem %s462_s26, 128  ;;  %p1316_p10 = scmp.ne.s32.totalorder %s1303_s28, 0 }
  0x7f   : > { %p831_p4 = scmp.ne.s32.totalorder %s462_s26, %s830_s7  ;;  %s955_s23 = smov [#allocation9]  }
  0x80   : > { %s834_s6 = sshll.u32 %s955_s23, 4  ;;  %s835_s6 = int_to_ptr.vmem [resolvable:$false] %s834_s6 }
  0x81   : > { %p832_p12 = pnand %p831_p4, %p1316_p10  ;;  %s836_s9 = scalar_lea.vmem %s835_s6, 256 }
  0x82   : > { %p837_p8 = scmp.lt.s32.totalorder %s462_s26, %s835_s6  ;;  %p838_p9 = scmp.lt.s32.totalorder %s836_s9, %s830_s7 }
  0x83   : > { %648 = vmatmul.mubr.msk.bf16.vlgmr.msra.gmra.mrb[0].mxu0 %vm317_vm1, %v315_v3  ;;  %p833_p1 = pneg %p832_p12 }
  0x84   : > { %p839_p6 = por %p838_p9, %p837_p8 }
  0x86   : > { %p840_p13 = pnand %p839_p6, %p833_p1 }
 0x156   : > { %v358_v4 = vpop.f32.mrb[0].mxu0 }
 0x157   : > { %v649_v5 = vpop.f32.mrb[1].mxu0  ;;  %v365_v6 = vsel %vm364_vm2, %v358_v4, -inf }
 0x158   : > { %366 = vmax.xlane.f32.xlu0 %v365_v6  ;;  %v361_v7 = vpop.f32.mrb[2].mxu0 }
 0x159   : > { %v650_v8 = vpop.f32.mrb[3].mxu0 }
 0x1e5   : > { %v367_v9 = vpop.xlane.xlu0 %366 }
 0x1e6   : > { %v368_v10 = vsub.f32 %v358_v4, %v367_v9 }
 0x1e8   : > { %v369_v11 = vmul.f32 1.442695, %v368_v10 }
 0x1ea   : > { %736 = vpow2.f32 %v369_v11 }
 0x1f4   : > { %v737_v12 = vpop.eup %736 }
 0x1f5   : > { %v371_v13 = vsel %vm364_vm2, %v737_v12, 0.0 }
 0x1f6   : > { %372 = vadd.xlane.f32.xlu0 %v371_v13 }
 0x283   : > { %v373_v16 = vpop.xlane.xlu0 %372 }
 0x284   : > { %738 = vrcp.f32 %v373_v16 }
 0x28e   : > { %v739_v17 = vpop.eup %738 }
 0x28f   : > { %v375_v18 = vmul.f32 %v739_v17, %v737_v12 }
 0x291   : > { %v376_v19 = vpack.c.bf16 %v375_v18, %v375_v18  ;;  %425 = vst.msk [vmem:[%s313_s5] sm:$0xff] %vm364_vm2, %v375_v18 }
 0x293   : > { %654 = vmatmul.mubr.msk.bf16.vlgmr.msra.gmra.mrb[0].mxu1 %vm364_vm2, %v376_v19 }
 0x294   : > { %843 = shalt.err (!%p840_p13)
}
 0x295   : > { %s844_s10 = scalar_lea.hbm %s1207_s13, 128  ;;  %s848_s19 = scalar_lea.hbm %s1288_s4, 256 }
 0x296   : > { %p845_p11 = scmp.ne.s32.totalorder %s1207_s13, %s844_s10  ;;  %p849_p7 = scmp.lt.u32.totalorder %s1207_s13, %s1288_s4 }
 0x297   : > { %p850_p3 = scmp.lt.u32.totalorder %s848_s19, %s844_s10  ;;  %p852_p4 = scmp.lt.u32.totalorder %s844_s10, %s1207_s13 }
 0x298   : > { %p846_p2 = pnand %p845_p11, %p1316_p10 }
 0x299   : > { %p851_p0 = por %p850_p3, %p849_p7 }
 0x29a   : > { %p847_p5 = pneg %p846_p2 }
 0x29b   : > { %p853_p12 = por %p852_p4, %p851_p0 }
 0x29d   : > { %p854_p1 = pnand %p853_p12, %p847_p5 }
 0x29f   : > { %857 = shalt.err (!%p854_p1)
}
 0x2a0   : > { %664 = dma.vmem_to_hbm [thread:$0]  (%p1316_p10), %s462_s26, 128, %s1207_s13, %s433_s1  }
 0x2a1   : > { %s306_s24 = scalar_lea.vmem [#allocation8], %s631_s27  ;;  %s1234_s11 = scalar_lea.hbm %s1287_s3, %s637_s29 }
 0x2a2   : > { %s447_s21 = sshll.u32 %s306_s24, 4  ;;  %s428_s13 = scalar_lea.sflag [#allocation4], %s1174_s25  ;;  %s1236_s21 = int_to_ptr.vmem [resolvable:$true] %s447_s21 }
 0x2a3   : > { %s858_s26 = scalar_lea.vmem %s1236_s21, 128  ;;  %s956_s18 = smov [#allocation8]  }
 0x2a4   : > { %p859_p8 = scmp.ne.s32.totalorder %s1236_s21, %s858_s26  ;;  %s862_s27 = sshll.u32 %s956_s18, 4  ;;  %s863_s27 = int_to_ptr.vmem [resolvable:$false] %s862_s27 }
 0x2a5   : > { %s864_s29 = scalar_lea.vmem %s863_s27, 256  ;;  %p865_p13 = scmp.lt.s32.totalorder %s1236_s21, %s863_s27 }
 0x2a6   : > { %p860_p9 = pnand %p859_p8, %p1316_p10  ;;  %p866_p11 = scmp.lt.s32.totalorder %s864_s29, %s858_s26 }
 0x2a8   : > { %p861_p6 = pneg %p860_p9  ;;  %p867_p2 = por %p866_p11, %p865_p13 }
 0x2aa   : > { %p868_p5 = pnand %p867_p2, %p861_p6 }
 0x366   : > { %v419_v20 = vpop.f32.mrb[0].mxu1 }
 0x367   : > { %426 = vst.msk [vmem:[%s306_s24] sm:$0xff] %vm317_vm1, %v419_v20  ;;  %v655_v21 = vpop.f32.mrb[1].mxu1 }
 0x368   : > { %v422_v22 = vpop.f32.mrb[2].mxu1 }
 0x369   : > { %871 = shalt.err (!%p868_p5)
}
 0x36a   : > { %s872_s25 = scalar_lea.hbm %s1234_s11, 128  ;;  %s876_s23 = scalar_lea.hbm %s1287_s3, 256 }
 0x36b   : > { %p873_p7 = scmp.ne.s32.totalorder %s1234_s11, %s872_s25  ;;  %p877_p4 = scmp.lt.u32.totalorder %s1234_s11, %s1287_s3 }
 0x36c   : > { %p878_p12 = scmp.lt.u32.totalorder %s876_s23, %s872_s25  ;;  %p880_p8 = scmp.lt.u32.totalorder %s872_s25, %s1234_s11 }
 0x36d   : > { %p874_p3 = pnand %p873_p7, %p1316_p10 }
 0x36e   : > { %p879_p1 = por %p878_p12, %p877_p4 }
 0x36f   : > { %p875_p0 = pneg %p874_p3 }
 0x370   : > { %p881_p9 = por %p880_p8, %p879_p1 }
 0x372   : > { %p882_p6 = pnand %p881_p9, %p875_p0 }
 0x374   : > { %885 = shalt.err (!%p882_p6)
}
 0x375   : > { %663 = dma.vmem_to_hbm [thread:$0]  (%p1316_p10), %s1236_s21, 128, %s1234_s11, %s428_s13   ;;  %v656_v23 = vpop.f32.mrb[3].mxu1 }
 0x376 PF: > { %s1317_s10 = sld [smem:[#allocation16_spill]]  ;;  %s473_s12 = sand.u32 1, %s928_s15  }
 0x377   : > { %p1318_p13 = scmp.ne.s32.totalorder %s1305_s30, 0  ;;  %s474_s20 = scalar_lea.sflag [#allocation4], %s473_s12 }
 0x37c   : > { %p1319_p11 = scmp.ge.s32.totalorder %s1317_s10, 2 }
 0x37e   : > { %p678_p2 = pnand %p1319_p11, %p1318_p13 }
 0x380   : > { %919 = dma.done.wait (!%p678_p2), %s474_s20, 128  }
 0x381   : > { %921 = vsyncadd (!%p678_p2), %s474_s20, 4294967168  ;;  %s483_s19 = scalar_lea.sflag [#allocation10], %s473_s12 }
 0x382   : > { %923 = dma.done.wait (!%p678_p2), %s483_s19, 128  }
 0x383   : > { %925 = vsyncadd (!%p678_p2), %s483_s19, 4294967168  ;;  %s27_s20 = sadd.s32 1, %s1317_s10   ;;  %s1320_s28 = sld [smem:[#allocation18_spill]] }
 0x384   : > { %p24_p5 = scmp.ge.s32.totalorder %s27_s20, 4   ;;  %s1321_s18 = sld [smem:[#allocation15_spill]] }
 0x385   : > { %s1322_s19 = sld [smem:[#allocation17_spill]]  ;;  %s1323_s15 = smov %s932_s16 }
 0x386   : > { %s1324_s16 = smov %s936_s17  ;;  %26 = sbr.rel (!%p24_p5) target bundleno = 12 (0xc), region = 118 }
 0x389   : > { %s1325_s17 = smov %s1320_s28 }
 0x38d   :  { %488 = vsyncpa [#allocation3], 1 }
 0x38e   :  { %490 = vsyncpa [#allocation3 + $0x1], 1 }
 0x38f   :  { %491 = vsyncpa [#allocation6], 1 }
 0x390   :  { %493 = vsyncpa [#allocation6 + $0x1], 1 }
 0x391   :  { %494 = vsyncpa [#allocation4], 1 }
 0x392   :  { %496 = vsyncpa [#allocation4 + $0x1], 1 }
 0x393   :  { %497 = vsyncpa [#allocation10], 1 }
 0x394   :  { %499 = vsyncpa [#allocation10 + $0x1], 1 }

</bundles_post_ra>
